<compile_context>
chip_gen: v7x
topology: tpu7x:2x2x1
jax: 0.10.0
libtpu: 0.0.40
codegen_flags: <defaults>
</compile_context>

<pallas_src>
import jax
import jax.numpy as jnp
from jax import lax
from jax.experimental import pallas as pl
from jax.experimental.pallas import tpu as pltpu

_MiB = 1024 * 1024


# ----------------------------------------------------------------------------
# Hardware-aware sizing helpers
# ----------------------------------------------------------------------------
def _tpu_vmem_capacity_bytes():
    """Physical per-core VMEM capacity; conservative default if unknown."""
    try:
        return int(pltpu.get_tpu_info().vmem_capacity_bytes)
    except Exception:
        return 64 * _MiB  # v7x per-TC physical size; safe lower bound


def _vmem_budget_bytes(capacity):
    """~3/8 of physical VMEM: 48 MiB on v5e/v6e (128 MiB), 24 MiB on v7x
    (64 MiB).  vmem_limit_bytes is raised to match, so the 16/32 MiB scoped
    defaults do not bind."""
    return max(8 * _MiB, min(48 * _MiB, (capacity * 3) // 8))


def _is_multi_core_chip():
    """Best-effort: True for chips with >1 TensorCore per chip (v7x-class)."""
    try:
        kind = jax.devices()[0].device_kind.lower()
    except Exception:
        return False
    return ("v7" in kind) or ("tpu7" in kind)


def _choose_batch_tile(B, per_row_bytes, budget_bytes, multi_core):
    """Rows per grid step: biggest tile that fits the budget, multiple of 8
    (or == B).  Single-TC chips (v5e/v6e) get one step when everything fits;
    multi-TC chips (v7x) keep >= 2 batch blocks when B is large enough."""
    max_rows = max(1, budget_bytes // max(per_row_bytes, 1))
    if max_rows >= B:
        tb = B
    elif max_rows >= 8:
        tb = (max_rows // 8) * 8
    else:
        # Smallest tile satisfying the sublane rule; the caller checks the
        # real footprint against physical VMEM and falls back if still too big.
        tb = min(B, 8)
    # Cap rows/step so the strip-mined f32 accumulator stays in a few vregs.
    tb = min(tb, 128)
    if multi_core and tb >= B and B >= 16:
        half = (B + 1) // 2
        tb = ((half + 7) // 8) * 8
    return max(1, min(tb, B))


# ----------------------------------------------------------------------------
# Kernel
# ----------------------------------------------------------------------------
def _pool_one_modality(xf_ref, tail_ref, o_ref, *, n_lead, W, inv_pool, strip):
    """o[:, w] = inv_pool * ((tail[:, w] if tail) + sum_p xf[:, p*W + w])."""
    for off in range(0, W, strip):
        ws = min(strip, W - off)
        if tail_ref is not None:
            acc = tail_ref[:, off:off + ws].astype(jnp.float32)
            start_p = 0
        else:
            acc = xf_ref[:, off:off + ws].astype(jnp.float32)
            start_p = 1

        if n_lead - start_p <= 16:
            # Small pool count: fully unrolled static slices.
            for p in range(start_p, n_lead):
                s = p * W + off
                acc = acc + xf_ref[:, s:s + ws].astype(jnp.float32)
        else:
            aligned = (W % 128 == 0) and (off % 128 == 0)

            def body(p, a):
                s = p * W + off
                if aligned:
                    s = pl.multiple_of(s, 128)
                return a + xf_ref[:, pl.ds(s, ws)].astype(jnp.float32)

            acc = lax.fori_loop(start_p, n_lead, body, acc)

        o_ref[:, off:off + ws] = (acc * inv_pool).astype(o_ref.dtype)


def _make_pool_kernel(metas, tb):
    """Fused kernel over a list of modalities (each: xf [+tail] -> out)."""
    n_in = sum(2 if m["has_tail"] else 1 for m in metas)
    # Keep the live f32 accumulator per strip to a handful of vregs.
    strip = min(512, max(128, ((8192 // max(tb, 1)) // 128) * 128))

    def kernel(*refs):
        in_refs, out_refs = refs[:n_in], refs[n_in:]
        ii = 0
        for mi, m in enumerate(metas):
            xf_ref = in_refs[ii]
            ii += 1
            tail_ref = None
            if m["has_tail"]:
                tail_ref = in_refs[ii]
                ii += 1
            _pool_one_modality(
                xf_ref, tail_ref, out_refs[mi],
                n_lead=m["n_lead"], W=m["W"],
                inv_pool=1.0 / m["pool"], strip=strip)

    return kernel


# ----------------------------------------------------------------------------
# Host-side preparation / dispatch
# ----------------------------------------------------------------------------
def _avg_pool_reference(x, dst_len):
    """Pure-JAX reference of __avg_pool.align (also the extreme-size fallback)."""
    B, S, D = x.shape
    if S == dst_len:
        return x
    if S % dst_len == 0:
        pad_len, pool_size = 0, S // dst_len
    else:
        pad_len, pool_size = dst_len - S % dst_len, S // dst_len + 1
    if pad_len > 0:
        pad_x = jnp.broadcast_to(x[:, -1:, :], (B, pad_len, D))
        x = jnp.concatenate([x, pad_x], axis=1)
    return x.reshape(B, pool_size, dst_len, D).mean(axis=1)


def _prepare_modality(x, dst_len):
    B, S, D = x.shape
    W = dst_len * D
    n_full, rem = divmod(S, dst_len)
    itemsize = jnp.dtype(x.dtype).itemsize
    if rem == 0:
        pool, n_lead, has_tail, tail_f = n_full, n_full, False, None
    else:
        pool = n_full + 1
        n_lead = n_full
        pad_len = dst_len - rem
        has_tail = True
        # Output-sized tail group: remainder rows + last-frame padding.
        tail = jnp.concatenate(
            [x[:, n_full * dst_len:, :],
             jnp.broadcast_to(x[:, -1:, :], (B, pad_len, D))], axis=1)
        tail_f = tail.reshape(B, W)
    xf = x.reshape(B, S * D)  # free row-major view, no HBM copy
    # Per-row VMEM footprint (double-buffered in/out blocks).
    per_row_bytes = itemsize * (2 * S * D + (4 if has_tail else 2) * W)
    bytes_accessed = itemsize * B * (S * D + (2 if has_tail else 1) * W)
    return dict(xf=xf, tail_f=tail_f, has_tail=has_tail, W=W, pool=pool,
                n_lead=n_lead, flat_width=S * D, dtype=x.dtype,
                per_row_bytes=per_row_bytes, bytes_accessed=bytes_accessed)


def _run_pool_kernel(mods, B, tb, capacity, est_vmem):
    grid = (pl.cdiv(B, tb),)
    in_specs, inputs = [], []
    for m in mods:
        in_specs.append(pl.BlockSpec((tb, m["flat_width"]), lambda b: (b, 0)))
        inputs.append(m["xf"])
        if m["has_tail"]:
            in_specs.append(pl.BlockSpec((tb, m["W"]), lambda b: (b, 0)))
            inputs.append(m["tail_f"])
    out_specs = tuple(pl.BlockSpec((tb, m["W"]), lambda b: (b, 0)) for m in mods)
    out_shapes = tuple(jax.ShapeDtypeStruct((B, m["W"]), m["dtype"]) for m in mods)

    static_metas = [dict(has_tail=m["has_tail"], W=m["W"],
                         n_lead=m["n_lead"], pool=m["pool"]) for m in mods]
    kernel = _make_pool_kernel(static_metas, tb)

    vmem_limit = int(min((capacity * 7) // 8,
                         max(32 * _MiB, est_vmem + 4 * _MiB)))

    outs = pl.pallas_call(
        kernel,
        out_shape=out_shapes,
        grid=grid,
        in_specs=in_specs,
        out_specs=out_specs,
        compiler_params=pltpu.CompilerParams(
            dimension_semantics=("parallel",),
            vmem_limit_bytes=vmem_limit),
        cost_estimate=pl.CostEstimate(
            flops=sum(B * m["pool"] * m["W"] for m in mods),
            transcendentals=0,
            bytes_accessed=sum(m["bytes_accessed"] for m in mods)),
    )(*inputs)
    if not isinstance(outs, (list, tuple)):
        outs = (outs,)
    return list(outs)


def _avg_pool_align_many(xs, dst_len):
    """Align each x in xs ([B, S, D]) to dst_len via strided mean pooling.
    Modalities that need real pooling share ONE pallas_call when the fused
    working set fits the VMEM budget."""
    B = xs[0].shape[0]
    results = [None] * len(xs)
    kernel_mods = []
    for i, x in enumerate(xs):
        if x.shape[1] == dst_len:
            results[i] = x
            continue
        meta = _prepare_modality(x, dst_len)
        if meta["n_lead"] == 0:
            # pool == 1 (S < dst_len): the padded group IS the mean.
            results[i] = meta["tail_f"].reshape(B, dst_len, x.shape[2])
        else:
            meta["out_index"] = i
            kernel_mods.append(meta)

    if kernel_mods:
        capacity = _tpu_vmem_capacity_bytes()
        budget = _vmem_budget_bytes(capacity)
        multi_core = _is_multi_core_chip()
        fit_limit = (capacity * 4) // 5

        def try_run(group):
            per_row = sum(m["per_row_bytes"] for m in group)
            tb = _choose_batch_tile(B, per_row, budget, multi_core)
            est = tb * per_row
            if est > fit_limit:
                return False
            outs = _run_pool_kernel(group, B, tb, capacity, est)
            for m, o in zip(group, outs):
                i = m["out_index"]
                results[i] = o.reshape(B, dst_len, xs[i].shape[2])
            return True

        if not try_run(kernel_mods):
            # Fused working set too large for VMEM -> per-modality calls.
            for m in kernel_mods:
                if not try_run([m]):
                    # TODO(synk): restructure as a pool-group reduction grid
                    # (second 'arbitrary' axis + f32 accumulator) instead of
                    # this XLA fallback when a single row exceeds VMEM.
                    i = m["out_index"]
                    results[i] = _avg_pool_reference(xs[i], dst_len)
    return results


def _align_avg_pool(x, dst_len):
    return _avg_pool_align_many([x], dst_len)[0]


def align_subnet_forward(text_x, audio_x, video_x):
    """AlignSubNet.forward for mode='avg_pool' (the reference forward routes
    'conv1d' through the same path).  dst_len is the text sequence length."""
    dst_len = text_x.shape[1]
    if text_x.shape[1] == audio_x.shape[1] == video_x.shape[1]:
        return text_x, audio_x, video_x
    t, a, v = _avg_pool_align_many([text_x, audio_x, video_x], dst_len)
    return t, a, v


# ----------------------------------------------------------------------------
# Self-test
# ----------------------------------------------------------------------------
if __name__ == "__main__":
    key = jax.random.PRNGKey(0)
    k1, k2, k3, k4, k5 = jax.random.split(key, 5)

    B = 2
    dst_len = 8                      # text seq len == args.text_seq_len
    in_dim_t, in_dim_a, in_dim_v = 32, 16, 24
    seq_len_a, seq_len_v = 20, 12    # different from dst_len -> alignment runs

    text_x = jax.random.normal(k1, (B, dst_len, in_dim_t), dtype=jnp.float32)
    audio_x = jax.random.normal(k2, (B, seq_len_a, in_dim_a), dtype=jnp.float32)
    video_x = jax.random.normal(k3, (B, seq_len_v, in_dim_v), dtype=jnp.float32)

    t_out, a_out, v_out = align_subnet_forward(text_x, audio_x, video_x)
    jax.block_until_ready((t_out, a_out, v_out))

    # shape checks
    assert t_out.shape == (B, dst_len, in_dim_t)
    assert a_out.shape == (B, dst_len, in_dim_a)
    assert v_out.shape == (B, dst_len, in_dim_v)

    # numerical checks vs pure-JAX reference
    assert jnp.allclose(t_out, _avg_pool_reference(text_x, dst_len),
                        atol=1e-5, rtol=1e-5)
    assert jnp.allclose(a_out, _avg_pool_reference(audio_x, dst_len),
                        atol=1e-5, rtol=1e-5)
    assert jnp.allclose(v_out, _avg_pool_reference(video_x, dst_len),
                        atol=1e-5, rtol=1e-5)

    # extra coverage: evenly-divisible sequence (rem == 0, tail-free kernel path)
    even_x = jax.random.normal(k4, (B, 24, 16), dtype=jnp.float32)
    even_out = _align_avg_pool(even_x, dst_len)
    jax.block_until_ready(even_out)
    assert jnp.allclose(even_out, _avg_pool_reference(even_x, dst_len),
                        atol=1e-5, rtol=1e-5)

    # extra coverage: sequence shorter than dst_len (pool == 1, no kernel)
    short_x = jax.random.normal(k5, (B, 5, 24), dtype=jnp.float32)
    short_out = _align_avg_pool(short_x, dst_len)
    jax.block_until_ready(short_out)
    assert jnp.allclose(short_out, _avg_pool_reference(short_x, dst_len),
                        atol=1e-5, rtol=1e-5)

    print("KERNEL_OK")
</pallas_src>

<mosaic_0001>
module attributes {stable_mosaic.version = 11 : i64} {
  func.func @kernel(%arg0: i32, %arg1: memref<2x320xf32, #tpu.memory_space<vmem>>, %arg2: memref<2x128xf32, #tpu.memory_space<vmem>>, %arg3: memref<2x288xf32, #tpu.memory_space<vmem>>, %arg4: memref<2x192xf32, #tpu.memory_space<vmem>>, %arg5: memref<2x128xf32, #tpu.memory_space<vmem>>, %arg6: memref<2x192xf32, #tpu.memory_space<vmem>>) attributes {dimension_semantics = [#tpu.dimension_semantics<parallel>], iteration_bounds = array<i64: 1>, scalar_prefetch = 0 : i64, scratch_operands = 0 : i64, tpu.core_type = #tpu.core_type<tc>, window_params = [{transform_indices = @transform_0, window_bounds = array<i64: 2, 320>}, {transform_indices = @transform_1, window_bounds = array<i64: 2, 128>}, {transform_indices = @transform_2, window_bounds = array<i64: 2, 288>}, {transform_indices = @transform_3, window_bounds = array<i64: 2, 192>}, {transform_indices = @transform_4, window_bounds = array<i64: 2, 128>}, {transform_indices = @transform_5, window_bounds = array<i64: 2, 192>}]} {
    %c0 = arith.constant 0 : index
    %c0_0 = arith.constant 0 : index
    %0 = vector.load %arg2[%c0, %c0_0] : memref<2x128xf32, #tpu.memory_space<vmem>>, vector<2x128xf32>
    %c0_1 = arith.constant 0 : index
    %c0_2 = arith.constant 0 : index
    %1 = vector.load %arg1[%c0_1, %c0_2] : memref<2x320xf32, #tpu.memory_space<vmem>>, vector<2x128xf32>
    %2 = arith.addf %0, %1 : vector<2x128xf32>
    %c0_3 = arith.constant 0 : index
    %c128 = arith.constant 128 : index
    %3 = vector.load %arg1[%c0_3, %c128] : memref<2x320xf32, #tpu.memory_space<vmem>>, vector<2x128xf32>
    %4 = arith.addf %2, %3 : vector<2x128xf32>
    %cst = arith.constant 0.333333343 : f32
    %5 = vector.broadcast %cst : f32 to vector<2x128xf32>
    %6 = arith.mulf %4, %5 : vector<2x128xf32>
    %c0_4 = arith.constant 0 : index
    %c0_5 = arith.constant 0 : index
    %7 = vector.load %arg5[%c0_4, %c0_5] : memref<2x128xf32, #tpu.memory_space<vmem>>, vector<2x128xf32>
    tpu.vector_store %arg5[%c0_4, %c0_5], %6 {strides = array<i32>} : memref<2x128xf32, #tpu.memory_space<vmem>>, vector<2x128xf32>,
    %c0_6 = arith.constant 0 : index
    %c0_7 = arith.constant 0 : index
    %8 = vector.load %arg4[%c0_6, %c0_7] : memref<2x192xf32, #tpu.memory_space<vmem>>, vector<2x192xf32>
    %c0_8 = arith.constant 0 : index
    %c0_9 = arith.constant 0 : index
    %9 = vector.load %arg3[%c0_8, %c0_9] : memref<2x288xf32, #tpu.memory_space<vmem>>, vector<2x192xf32>
    %10 = arith.addf %8, %9 : vector<2x192xf32>
    %cst_10 = arith.constant 5.000000e-01 : f32
    %11 = vector.broadcast %cst_10 : f32 to vector<2x192xf32>
    %12 = arith.mulf %10, %11 : vector<2x192xf32>
    %c0_11 = arith.constant 0 : index
    %c0_12 = arith.constant 0 : index
    %13 = vector.load %arg6[%c0_11, %c0_12] : memref<2x192xf32, #tpu.memory_space<vmem>>, vector<2x192xf32>
    tpu.vector_store %arg6[%c0_11, %c0_12], %12 {strides = array<i32>} : memref<2x192xf32, #tpu.memory_space<vmem>>, vector<2x192xf32>,
    return
  }
  func.func @transform_0(%arg0: i32) -> (i32, i32) {
    %c0_i32 = arith.constant 0 : i32
    %c0_i32_0 = arith.constant 0 : i32
    return %arg0, %c0_i32 : i32, i32
  }
  func.func @transform_1(%arg0: i32) -> (i32, i32) {
    %c0_i32 = arith.constant 0 : i32
    %c0_i32_0 = arith.constant 0 : i32
    return %arg0, %c0_i32 : i32, i32
  }
  func.func @transform_2(%arg0: i32) -> (i32, i32) {
    %c0_i32 = arith.constant 0 : i32
    %c0_i32_0 = arith.constant 0 : i32
    return %arg0, %c0_i32 : i32, i32
  }
  func.func @transform_3(%arg0: i32) -> (i32, i32) {
    %c0_i32 = arith.constant 0 : i32
    %c0_i32_0 = arith.constant 0 : i32
    return %arg0, %c0_i32 : i32, i32
  }
  func.func @transform_4(%arg0: i32) -> (i32, i32) {
    %c0_i32 = arith.constant 0 : i32
    %c0_i32_0 = arith.constant 0 : i32
    return %arg0, %c0_i32 : i32, i32
  }
  func.func @transform_5(%arg0: i32) -> (i32, i32) {
    %c0_i32 = arith.constant 0 : i32
    %c0_i32_0 = arith.constant 0 : i32
    return %arg0, %c0_i32 : i32, i32
  }
}

</mosaic_0001>

<bundles_post_ra>
// kernel: tpu_custom_call.1
= control target key start
LH: loop header
LB: loop body
LE: loop exit
PB: predicated region body
PF: predicated region fallthrough
CT: control target
= control target key end

     0   :  { %11 = vsyncpa [#allocation3], 0  ;;  %s278_s0 = inlined_call_operand.hbm [shape: f32[2,320], index: 0, kind: input, shape index: {}]   ;;  %s279_s1 = inlined_call_operand.hbm [shape: f32[2,128], index: 1, kind: input, shape index: {}]   ;;  %s280_s2 = inlined_call_operand.vmem [shape: f32[2,288], index: 2, kind: input, shape index: {}]   ;;  %s281_s3 = inlined_call_operand.vmem [shape: f32[2,192], index: 3, kind: input, shape index: {}]   ;;  %s282_s4 = inlined_call_operand.hbm [shape: f32[2,128], index: 4, kind: output, shape index: {0}]   ;;  %s283_s5 = inlined_call_operand.hbm [shape: f32[2,192], index: 5, kind: output, shape index: {1}]  }
   0x1   :  { %12 = vsyncpa [#allocation6], 0 }
   0x2   :  { %13 = vsyncpa [#allocation4], 0 }
   0x3   :  { %14 = vsyncpa [#allocation9], 0  ;;  %s190_s18 = smov [#allocation2]   ;;  %s191_s20 = smov [#allocation5]  }
   0x4   :  { %s21_s19 = sshll.u32 %s190_s18, 4  ;;  %s31_s21 = sshll.u32 %s191_s20, 4  ;;  %s22_s19 = int_to_ptr.vmem [resolvable:$true] %s21_s19  ;;  %s32_s21 = int_to_ptr.vmem [resolvable:$true] %s31_s21 }
   0x5   :  { %s94_s24 = scalar_lea.hbm %s278_s0, 96 }
   0x6   :  { %p95_p0 = scmp.ne.s32.totalorder %s278_s0, %s94_s24  ;;  %p98_p1 = scmp.lt.u32.totalorder %s94_s24, %s278_s0 }
   0x8   :  { %p100_p2 = pnand %p98_p1, %p95_p0 }
   0xa   :  { %103 = shalt.err (!%p100_p2)
}
   0xb   :  { %s104_s29 = scalar_lea.vmem %s22_s19, 96  ;;  %p109_p4 = scmp.lt.s32.totalorder %s22_s19, %s22_s19 }
   0xc   :  { %p105_p3 = scmp.ne.s32.totalorder %s22_s19, %s104_s29  ;;  %p110_p5 = scmp.lt.s32.totalorder %s104_s29, %s104_s29 }
   0xe   :  { %p111_p6 = por %p110_p5, %p109_p4 }
  0x10   :  { %p112_p7 = pnand %p111_p6, %p105_p3 }
  0x12   :  { %115 = shalt.err (!%p112_p7)
}
  0x13   :  { %24 = dma.hbm_to_vmem [thread:$0]  %s278_s0, 96, %s22_s19, [#allocation3]  }
  0x14   :  { %s116_s9 = scalar_lea.hbm %s279_s1, 32 }
  0x15   :  { %p117_p8 = scmp.ne.s32.totalorder %s279_s1, %s116_s9  ;;  %p120_p9 = scmp.lt.u32.totalorder %s116_s9, %s279_s1 }
  0x17   :  { %p122_p10 = pnand %p120_p9, %p117_p8 }
  0x19   :  { %125 = shalt.err (!%p122_p10)
}
  0x1a   :  { %s126_s14 = scalar_lea.vmem %s32_s21, 32  ;;  %p131_p12 = scmp.lt.s32.totalorder %s32_s21, %s32_s21 }
  0x1b   :  { %p127_p11 = scmp.ne.s32.totalorder %s32_s21, %s126_s14  ;;  %p132_p13 = scmp.lt.s32.totalorder %s126_s14, %s126_s14 }
  0x1d   :  { %p133_p0 = por %p132_p13, %p131_p12 }
  0x1f   :  { %p134_p1 = pnand %p133_p0, %p127_p11 }
  0x21   :  { %137 = shalt.err (!%p134_p1)
}
  0x22   :  { %34 = dma.hbm_to_vmem [thread:$0]  %s279_s1, 32, %s32_s21, [#allocation6]  }
  0x23   :  { %182 = dma.done.wait [#allocation3], 96  }
  0x24   :  { %183 = vsyncadd [#allocation3], 4294967200 }
  0x25   :  { %184 = dma.done.wait [#allocation6], 32  }
  0x26   :  { %185 = vsyncadd [#allocation6], 4294967264  ;;  %vm56_vm0 = vcmask 1041408   ;;  %vm57_vm1 = vcmask 519170   ;;  %v45_v0 = vld [vmem:[#allocation5] sm:$0x3] }
  0x27   :  { %v46_v1 = vld [vmem:[#allocation2] sm:$0x3]  ;;  %v48_v2 = vld [vmem:[#allocation2 + $0x2] sm:$0x3]  ;;  %s192_s20 = smov [#allocation8]   ;;  %s193_s21 = smov [#allocation7]   ;;  %vm58_vm2 = vmor %vm57_vm1, %vm56_vm0 }
  0x28   :  { %v47_v3 = vadd.f32 %v46_v1, %v45_v0  ;;  %v52_v4 = vld [vmem:[%s281_s3] sm:$0xf]  ;;  %s76_s1 = sshll.u32 %s192_s20, 4  ;;  %s66_s22 = sshll.u32 %s193_s21, 4  ;;  %s77_s1 = int_to_ptr.vmem [resolvable:$true] %s76_s1  ;;  %s67_s22 = int_to_ptr.vmem [resolvable:$true] %s66_s22 }
  0x29   :  { %v53_v5 = vld [vmem:[%s280_s2] sm:$0xf]  ;;  %s138_s23 = scalar_lea.vmem %s77_s1, 64  ;;  %p143_p3 = scmp.lt.s32.totalorder %s77_s1, %s77_s1 }
  0x2a   :  { %v54_v6 = vadd.f32 %v53_v5, %v52_v4  ;;  %v49_v7 = vadd.f32 %v48_v2, %v47_v3  ;;  %p139_p2 = scmp.ne.s32.totalorder %s77_s1, %s138_s23  ;;  %p144_p4 = scmp.lt.s32.totalorder %s138_s23, %s138_s23 }
  0x2c   :  { %v55_v8 = vmul.f32 0.5, %v54_v6  ;;  %v50_v9 = vmul.f32 0.33333334, %v49_v7  ;;  %p145_p5 = por %p144_p4, %p143_p3 }
  0x2e   :  { %59 = vst.msk [vmem:[#allocation8] sm:$0xf] %vm58_vm2, %v55_v8  ;;  %51 = vst [vmem:[#allocation7] sm:$0x3] %v50_v9  ;;  %p146_p6 = pnand %p145_p5, %p139_p2 }
  0x30   :  { %149 = shalt.err (!%p146_p6)
}
  0x31   :  { %s150_s24 = scalar_lea.hbm %s283_s5, 64 }
  0x32   :  { %p151_p7 = scmp.ne.s32.totalorder %s283_s5, %s150_s24  ;;  %p154_p8 = scmp.lt.u32.totalorder %s150_s24, %s283_s5 }
  0x34   :  { %p156_p9 = pnand %p154_p8, %p151_p7 }
  0x36   :  { %159 = shalt.err (!%p156_p9)
}
  0x37   :  { %79 = dma.vmem_to_hbm [thread:$0]  %s77_s1, 64, %s283_s5, [#allocation9]  }
  0x38   :  { %s160_s6 = scalar_lea.vmem %s67_s22, 32  ;;  %p165_p11 = scmp.lt.s32.totalorder %s67_s22, %s67_s22 }
  0x39   :  { %p161_p10 = scmp.ne.s32.totalorder %s67_s22, %s160_s6  ;;  %p166_p12 = scmp.lt.s32.totalorder %s160_s6, %s160_s6 }
  0x3b   :  { %p167_p13 = por %p166_p12, %p165_p11 }
  0x3d   :  { %p168_p0 = pnand %p167_p13, %p161_p10 }
  0x3f   :  { %171 = shalt.err (!%p168_p0)
}
  0x40   :  { %s172_s9 = scalar_lea.hbm %s282_s4, 32 }
  0x41   :  { %p173_p1 = scmp.ne.s32.totalorder %s282_s4, %s172_s9  ;;  %p176_p2 = scmp.lt.u32.totalorder %s172_s9, %s282_s4 }
  0x43   :  { %p178_p3 = pnand %p176_p2, %p173_p1 }
  0x45   :  { %181 = shalt.err (!%p178_p3)
}
  0x46   :  { %69 = dma.vmem_to_hbm [thread:$0]  %s67_s22, 32, %s282_s4, [#allocation4]  }
  0x47   :  { %186 = dma.done.wait [#allocation4], 32  }
  0x48   :  { %187 = vsyncadd [#allocation4], 4294967264 }
  0x49   :  { %188 = dma.done.wait [#allocation9], 64  }
  0x4a   :  { %189 = vsyncadd [#allocation9], 4294967232 }
  0x4b   :  { %86 = vsyncpa [#allocation3], 1 }
  0x4c   :  { %87 = vsyncpa [#allocation6], 1 }
  0x4d   :  { %88 = vsyncpa [#allocation4], 1 }
  0x4e   :  { %89 = vsyncpa [#allocation9], 1 }

</bundles_post_ra>
